<compile_context>
chip_gen: v5e
topology: v5e:2x2
jax: 0.10.0
libtpu: 0.0.40
codegen_flags: <defaults>
</compile_context>

<pallas_src>
import jax
import jax.numpy as jnp
from jax.experimental import pallas as pl
from jax.experimental.pallas import tpu as pltpu


def _round_up(x, m):
    return ((x + m - 1) // m) * m


# ----------------------------- Pallas kernels ------------------------------

def project_kernel(x_ref, w_ref, xw_ref):
    # x_ref:  (tm, F)  bf16 node-feature row tile
    # w_ref:  (F, Hp)  bf16 GCN weight, lane-padded to Hp (multiple of 128)
    # xw_ref: (tm, Hp) bf16 projected features (X @ W)
    xw_ref[...] = jnp.dot(
        x_ref[...], w_ref[...], preferred_element_type=jnp.float32
    ).astype(xw_ref.dtype)


def aggregate_kernel(a_ref, xw_ref, b_ref, o_ref):
    # a_ref:  (tm, Np) bf16 normalized-adjacency row tile
    # xw_ref: (Np, Hp) bf16 projected features (resident across the grid)
    # b_ref:  (1, Hp)  f32 bias
    # o_ref:  (tm, Hp) f32 output tile (lane-dense, unmasked stores)
    o_ref[...] = (
        jnp.dot(a_ref[...], xw_ref[...], preferred_element_type=jnp.float32)
        + b_ref[...]
    )


# ------------------------------- wrapper ------------------------------------

def gcn_forward(a_hat, x, w, b, *, tm=None):
    """GCNConv forward: A_hat @ (X @ W) + b, tiled over adjacency rows."""
    N, F = x.shape
    H = w.shape[1]

    # Lane-dense hidden dim and tile-aligned node dim.
    Hp = _round_up(H, 128)
    if tm is None:
        tm = min(_round_up(N, 8), 256)   # MXU-sized row tile
    Np = _round_up(N, tm)

    # bf16 MXU inputs, zero-padded (padded rows/cols contribute nothing and
    # padded output rows are sliced away).
    a_p = jnp.zeros((Np, Np), jnp.bfloat16).at[:N, :N].set(a_hat.astype(jnp.bfloat16))
    x_p = jnp.zeros((Np, F), jnp.bfloat16).at[:N, :].set(x.astype(jnp.bfloat16))
    w_p = jnp.zeros((F, Hp), jnp.bfloat16).at[:, :H].set(w.astype(jnp.bfloat16))
    b_p = jnp.zeros((1, Hp), jnp.float32).at[0, :H].set(b.astype(jnp.float32))

    grid = (Np // tm,)

    # Kernel 1: XW = X @ W  (tiny projection, row-tiled)
    xw = pl.pallas_call(
        project_kernel,
        out_shape=jax.ShapeDtypeStruct((Np, Hp), jnp.bfloat16),
        grid_spec=pltpu.PrefetchScalarGridSpec(
            num_scalar_prefetch=0,
            grid=grid,
            in_specs=[
                pl.BlockSpec((tm, F), lambda i: (i, 0)),
                pl.BlockSpec((F, Hp), lambda i: (0, 0)),
            ],
            out_specs=pl.BlockSpec((tm, Hp), lambda i: (i, 0)),
        ),
        compiler_params=pltpu.CompilerParams(dimension_semantics=("parallel",)),
    )(x_p, w_p)

    # Kernel 2: O = A_hat @ XW + b  (dominant matmul, parallel row tiles)
    out = pl.pallas_call(
        aggregate_kernel,
        out_shape=jax.ShapeDtypeStruct((Np, Hp), jnp.float32),
        grid_spec=pltpu.PrefetchScalarGridSpec(
            num_scalar_prefetch=0,
            grid=grid,
            in_specs=[
                pl.BlockSpec((tm, Np), lambda i: (i, 0)),   # adjacency row tile
                pl.BlockSpec((Np, Hp), lambda i: (0, 0)),   # resident XW
                pl.BlockSpec((1, Hp), lambda i: (0, 0)),    # bias
            ],
            out_specs=pl.BlockSpec((tm, Hp), lambda i: (i, 0)),
        ),
        compiler_params=pltpu.CompilerParams(dimension_semantics=("parallel",)),
    )(a_p, xw, b_p)

    return out[:N, :H]


# ---------------------------- plain-JAX glue ---------------------------------

def build_normalized_adjacency(edge_index, num_nodes):
    """Dense D^{-1/2}(A+I)D^{-1/2}, adding self-loops only where missing
    (matches PyG GCNConv's add_remaining_self_loops behaviour)."""
    src, dst = edge_index
    a = jnp.zeros((num_nodes, num_nodes), jnp.float32)
    a = a.at[dst, src].set(1.0)                     # message j -> i: row i, col j
    diag = jnp.maximum(jnp.diagonal(a), 1.0)        # self-loop weight 1 if absent
    idx = jnp.arange(num_nodes)
    a = a.at[idx, idx].set(diag)
    deg = a.sum(axis=1)
    d_inv_sqrt = jnp.where(deg > 0, 1.0 / jnp.sqrt(deg), 0.0)
    return d_inv_sqrt[:, None] * a * d_inv_sqrt[None, :]


def glorot_uniform(key, shape):
    fan_in, fan_out = shape
    limit = jnp.sqrt(6.0 / (fan_in + fan_out))
    return jax.random.uniform(key, shape, jnp.float32, -limit, limit)


if __name__ == "__main__":
    key = jax.random.PRNGKey(0)
    N, F, H = 64, 32, 16          # num_nodes, in_channels (features.shape[1]), num_hidden

    k_x, k_e, k_w = jax.random.split(key, 3)

    # deterministic node features
    x = jax.random.normal(k_x, (N, F), jnp.float32)

    # deterministic symmetric edge set: ring + a few chords
    ring_src = jnp.arange(N)
    ring_dst = (jnp.arange(N) + 1) % N
    chord_src = jax.random.randint(k_e, (32,), 0, N)
    chord_dst = (chord_src + 7) % N
    src = jnp.concatenate([ring_src, ring_dst, chord_src, chord_dst])
    dst = jnp.concatenate([ring_dst, ring_src, chord_dst, chord_src])
    edge_index = jnp.stack([src, dst], axis=0)      # [2, E]

    # GCNConv parameters: glorot weight, zero bias (matches PyG default init)
    w = glorot_uniform(k_w, (F, H))
    b = jnp.zeros((H,), jnp.float32)

    # glue (plain JAX): densify + symmetrically normalize the adjacency
    a_hat = build_normalized_adjacency(edge_index, N)

    out = gcn_forward(a_hat, x, w, b)
    out = jax.block_until_ready(out)
    assert out.shape == (N, H)

    # reference consistent with the kernel's bf16 MXU inputs / f32 accumulation
    a_bf = a_hat.astype(jnp.bfloat16).astype(jnp.float32)
    x_bf = x.astype(jnp.bfloat16).astype(jnp.float32)
    w_bf = w.astype(jnp.bfloat16).astype(jnp.float32)
    xw_bf = (x_bf @ w_bf).astype(jnp.bfloat16).astype(jnp.float32)
    ref_bf16 = a_bf @ xw_bf + b[None, :]
    assert jnp.allclose(out, ref_bf16, atol=1e-3, rtol=1e-3)

    # loose check against the pure-f32 GCN reference (bf16 rounding only)
    ref_f32 = a_hat @ (x @ w) + b[None, :]
    assert jnp.allclose(out, ref_f32, atol=1e-1, rtol=1e-1)

    print("KERNEL_OK")
</pallas_src>

<mosaic_0001>
module attributes {stable_mosaic.version = 11 : i64} {
  func.func @project_kernel(%arg0: i32, %arg1: memref<64x32xbf16, #tpu.memory_space<vmem>>, %arg2: memref<32x128xbf16, #tpu.memory_space<vmem>>, %arg3: memref<64x128xbf16, #tpu.memory_space<vmem>>) attributes {dimension_semantics = [#tpu.dimension_semantics<parallel>], iteration_bounds = array<i64: 1>, scalar_prefetch = 0 : i64, scratch_operands = 0 : i64, tpu.core_type = #tpu.core_type<tc>, window_params = [{transform_indices = @transform_0, window_bounds = array<i64: 64, 32>}, {pipeline_mode = #tpu.pipeline_mode<synchronous>, transform_indices = @transform_1, window_bounds = array<i64: 32, 128>}, {transform_indices = @transform_2, window_bounds = array<i64: 64, 128>}]} {
    %c0 = arith.constant 0 : index
    %c0_0 = arith.constant 0 : index
    %0 = vector.load %arg1[%c0, %c0_0] : memref<64x32xbf16, #tpu.memory_space<vmem>>, vector<64x32xbf16>
    %c0_1 = arith.constant 0 : index
    %c0_2 = arith.constant 0 : index
    %1 = vector.load %arg2[%c0_1, %c0_2] : memref<32x128xbf16, #tpu.memory_space<vmem>>, vector<32x128xbf16>
    %cst = arith.constant dense<0.000000e+00> : vector<64x128xf32>
    %2 = tpu.matmul %0, %1, %cst {dimension_numbers = #tpu.dot_dimension_numbers<[1], [0], [0], [1], [0, 0, 1, 1], [], []>} : vector<64x32xbf16>, vector<32x128xbf16>, vector<64x128xf32> -> vector<64x128xf32>
    %3 = arith.truncf %2 : vector<64x128xf32> to vector<64x128xbf16>
    %c0_3 = arith.constant 0 : index
    %c0_4 = arith.constant 0 : index
    %4 = vector.load %arg3[%c0_3, %c0_4] : memref<64x128xbf16, #tpu.memory_space<vmem>>, vector<64x128xbf16>
    tpu.vector_store %arg3[%c0_3, %c0_4], %3 {strides = array<i32>} : memref<64x128xbf16, #tpu.memory_space<vmem>>, vector<64x128xbf16>,
    return
  }
  func.func @transform_0(%arg0: i32) -> (i32, i32) {
    %c0_i32 = arith.constant 0 : i32
    %c0_i32_0 = arith.constant 0 : i32
    return %arg0, %c0_i32 : i32, i32
  }
  func.func @transform_1(%arg0: i32) -> (i32, i32) {
    %c0_i32 = arith.constant 0 : i32
    %c0_i32_0 = arith.constant 0 : i32
    %c0_i32_1 = arith.constant 0 : i32
    return %c0_i32, %c0_i32_0 : i32, i32
  }
  func.func @transform_2(%arg0: i32) -> (i32, i32) {
    %c0_i32 = arith.constant 0 : i32
    %c0_i32_0 = arith.constant 0 : i32
    return %arg0, %c0_i32 : i32, i32
  }
}

</mosaic_0001>

<bundles_post_ra>
// kernel: tpu_custom_call.1
= control target key start
LH: loop header
LB: loop body
LE: loop exit
PB: predicated region body
PF: predicated region fallthrough
CT: control target
= control target key end

     0   :  { %s264_s0 = inlined_call_operand.vmem [shape: bf16[64,32], index: 0, kind: input, shape index: {}]   ;;  %s265_s1 = inlined_call_operand.vmem [shape: bf16[32,128], index: 1, kind: input, shape index: {}]   ;;  %s266_s2 = inlined_call_operand.hbm [shape: bf16[64,128], index: 2, kind: output, shape index: {}]  }
   0x1   :  { %v166_v0 = vld [vmem:[%s265_s1 + $0x8] sm:$0xff]  ;;  %v165_v1 = vld [vmem:[%s265_s1] sm:$0xff] }
   0x2   :  { %76 = vmatpush.bf16.msra.mxu0 %v166_v0  ;;  %190 = vmatpush.bf16.msra.mxu1 %v166_v0 }
   0x3   :  { %7 = vsyncpa [#allocation3], 0  ;;  %191 = vmatpush.bf16.msra.mxu2 %v166_v0  ;;  %192 = vmatpush.bf16.msra.mxu3 %v166_v0  ;;  %v161_v2 = vld [vmem:[%s264_s0] sm:$0xff]  ;;  %v162_v3 = vld [vmem:[%s264_s0 + $0x8] sm:$0xff]  ;;  %vm57_vm0 = vcmask 261120   ;;  %s225_s20 = smov [#allocation2]  }
   0x4   :  { %v163_v4 = vld [vmem:[%s264_s0 + $0x10] sm:$0xff]  ;;  %v164_v5 = vld [vmem:[%s264_s0 + $0x18] sm:$0xff]  ;;  %s119_s21 = sshll.u32 %s225_s20, 4  ;;  %s121_s23 = sshll.u32 %s266_s2, 4  ;;  %s120_s21 = int_to_ptr.vmem [resolvable:$true] %s119_s21  ;;  %s122_s23 = int_to_ptr.hbm [resolvable:$true] %s121_s23 }
   0x5   :  { %s226_s24 = smov 64   ;;  %s227_s25 = smov 4  }
   0x6   :  { %77 = vmatpush.bf16.msra.mxu0 %v165_v1  ;;  %193 = vmatpush.bf16.msra.mxu1 %v165_v1 }
   0x7   :  { %194 = vmatpush.bf16.msra.mxu2 %v165_v1  ;;  %195 = vmatpush.bf16.msra.mxu3 %v165_v1 }
   0x9   :  { %157 = vmatmul.msk.bf16.vlgmr.msra.gmra.mxu0 %vm57_vm0, %v161_v2  ;;  %158 = vmatmul.msk.bf16.vlgmr.msra.gmra.mxu1 %vm57_vm0, %v162_v3 }
   0xa   :  { %159 = vmatmul.msk.bf16.vlgmr.msra.gmra.mxu2 %vm57_vm0, %v163_v4  ;;  %160 = vmatmul.msk.bf16.vlgmr.msra.gmra.mxu3 %vm57_vm0, %v164_v5 }
  0x86   :  { %v79_v6 = vpop.f32.mrf.mxu0  ;;  %v84_v7 = vpop.f32.mrf.mxu1 }
  0x8d   :  { %v89_v8 = vpop.f32.mrf.mxu2  ;;  %v94_v9 = vpop.f32.mrf.mxu3 }
  0x8e   :  { %v81_v10 = vpop.f32.mrf.mxu0  ;;  %v86_v11 = vpop.f32.mrf.mxu1 }
  0x8f   :  { %v170_v12 = vpack.c.bf16 %v81_v10, %v79_v6  ;;  %v175_v13 = vpack.c.bf16 %v86_v11, %v84_v7 }
  0x91   :  { %171 = vst [vmem:[#allocation2] sm:$0xff] %v170_v12  }
  0x92   :  { %187 = vst [vmem:[#allocation2 + $0x8] sm:$0xff] %v175_v13  }
  0x95   :  { %v91_v14 = vpop.f32.mrf.mxu2  ;;  %v96_v15 = vpop.f32.mrf.mxu3 }
  0x96   :  { %v180_v16 = vpack.c.bf16 %v91_v14, %v89_v8  ;;  %v185_v17 = vpack.c.bf16 %v96_v15, %v94_v9 }
  0x98   :  { %188 = vst [vmem:[#allocation2 + $0x10] sm:$0xff] %v180_v16  }
  0x99   :  { %189 = vst [vmem:[#allocation2 + $0x18] sm:$0xff] %v185_v17  }
  0x9a   :  { %127 = dma.vmem_to_hbm [thread:$0]  %s120_s21, 512, %s122_s23, [#allocation3], %s226_s24, %s226_s24, %s227_s25  }
  0x9b   :  { %223 = dma.done.wait [#allocation3], 512  }
  0x9c   :  { %224 = vsyncadd [#allocation3], 4294966784 }
  0x9d   :  { %132 = vsyncpa [#allocation3], 1 }

</bundles_post_ra>
